<compile_context>
chip_gen: v7x
topology: tpu7x:2x2x1
jax: 0.10.0
libtpu: 0.0.40
codegen_flags: <defaults>
</compile_context>

<pallas_src>
import jax
import jax.numpy as jnp
from jax.experimental import pallas as pl
from jax.experimental.pallas import tpu as pltpu


# ----------------------------- Pallas kernel --------------------------------
def manager_forward_kernel(z_ref, w1t_ref, b1t_ref, wstt_ref, bstt_ref, o_ref):
    """Applies K affine-coupling flows to one lane-dense (D, tb) batch tile.

    Layout: activations are (features, batch) so the batch (tb >= 128 lanes)
    sits on the lane axis; weights are pre-transposed so every dot is W^T@act.
    Matmul operands are bf16, accumulation is f32.
    """
    D2 = z_ref.shape[0] // 2                      # multiple of 8 (asserted)
    z1 = z_ref[:D2, :]                            # (D2, tb) f32, sublane-aligned
    z2 = z_ref[D2:, :]                            # (D2, tb) f32

    K = w1t_ref.shape[0]                          # static number of flows
    # K is small & static -> unrolled Python loop. (Switch to lax.fori_loop
    # with pl.ds-indexed weight loads if K grows beyond ~8 to bound vreg
    # live ranges.)
    for k in range(K):
        w1t = w1t_ref[k]                          # (H,    D2) bf16
        b1t = b1t_ref[k]                          # (H,    1)  f32
        wstt = wstt_ref[k]                        # (2*D2, H)  bf16 (Ws|Wt fused)
        bstt = bstt_ref[k]                        # (2*D2, 1)  f32  (bs|bt fused)

        # (H, tb) = (H, D2) @ (D2, tb): bf16 operands, f32 accumulate.
        h = jnp.tanh(
            jnp.dot(w1t, z1.astype(jnp.bfloat16),
                    preferred_element_type=jnp.float32) + b1t)
        # Single fused dot for the s/t stage: (2*D2, tb).
        st = jnp.dot(wstt, h.astype(jnp.bfloat16),
                     preferred_element_type=jnp.float32) + bstt
        s = jnp.tanh(st[:D2, :])                  # sublane-aligned row split
        t = st[D2:, :]

        z2 = z2 * jnp.exp(s) + t                  # EUP exp overlaps next MXU
        # swap halves so the next flow transforms the other partition
        z1, z2 = z2, z1

    # Combined output write: rows [0:D2]=z1, [D2:D]=z2, 8-aligned offsets.
    o_ref[:D2, :] = z1.astype(o_ref.dtype)
    o_ref[D2:, :] = z2.astype(o_ref.dtype)


# ----------------------------- wrapper ---------------------------------------
def _pick_tb(B):
    """Largest lane-dense batch tile that still yields >=2 grid steps
    (so both v7x TensorCores get work); falls back to a single full block."""
    if B % 128 != 0:
        return B            # full batch as a single block (equals array dim)
    for cand in (2048, 1024, 512, 256, 128):
        if B % cand == 0 and B // cand >= 2:
            return cand
    return 128              # B == 128: one lane-dense block, grid=(1,)


def manager_forward(zt, params, *, tb=None):
    """zt: (D, B) float32, feature-major batch (batch on lanes).

    params: dict from init_params (pre-transposed, s/t-fused, bf16 weights).
    Returns the transformed batch, also (D, B).
    """
    D, B = zt.shape
    assert D % 2 == 0 and (D // 2) % 8 == 0, \
        "D/2 must be a multiple of 8 for aligned sublane splits/stores"
    if tb is None:
        tb = _pick_tb(B)
    assert B % tb == 0

    w1t, b1t = params["w1t"], params["b1t"]
    wstt, bstt = params["wstt"], params["bstt"]

    # Constant (grid-invariant) weight blocks: full arrays, index_map -> 0.
    full = lambda a: pl.BlockSpec(a.shape, lambda i, _n=a.ndim: (0,) * _n)
    act_spec = pl.BlockSpec((D, tb), lambda i: (0, i))

    return pl.pallas_call(
        manager_forward_kernel,
        out_shape=jax.ShapeDtypeStruct((D, B), zt.dtype),
        grid_spec=pltpu.PrefetchScalarGridSpec(
            num_scalar_prefetch=0,
            grid=(B // tb,),
            in_specs=[
                act_spec,                      # z (D, tb) batch tile
                full(w1t), full(b1t),          # stacked flow weights (VMEM-resident)
                full(wstt), full(bstt),
            ],
            out_specs=act_spec,
        ),
        compiler_params=pltpu.CompilerParams(
            dimension_semantics=("parallel",)),
    )(zt, w1t, b1t, wstt, bstt)


# ----------------------------- pure-JAX reference -----------------------------
def manager_forward_ref(zt, params):
    """Reference in the same feature-major layout, f32 math on the stored
    (bf16) weights upcast to f32."""
    D2 = zt.shape[0] // 2
    z1, z2 = zt[:D2], zt[D2:]
    K = params["w1t"].shape[0]
    for k in range(K):
        w1 = params["w1t"][k].astype(jnp.float32)
        wst = params["wstt"][k].astype(jnp.float32)
        h = jnp.tanh(w1 @ z1 + params["b1t"][k])
        st = wst @ h + params["bstt"][k]
        s = jnp.tanh(st[:D2])
        t = st[D2:]
        z2 = z2 * jnp.exp(s) + t
        z1, z2 = z2, z1
    return jnp.concatenate([z1, z2], axis=0)


# ----------------------------- param init ------------------------------------
def init_params(key, *, num_flows, dim, hidden):
    """Init directly in kernel layout: pre-transposed ("weights-left"),
    Ws/Wt fused along rows, matmul weights bf16, biases f32 (post-acc add)."""
    d2 = dim // 2
    ks = jax.random.split(key, 6)
    scale = 0.1
    w1t = scale * jax.random.normal(ks[0], (num_flows, hidden, d2), jnp.float32)
    b1t = scale * jax.random.normal(ks[1], (num_flows, hidden, 1), jnp.float32)
    wst = scale * jax.random.normal(ks[2], (num_flows, d2, hidden), jnp.float32)
    bst = scale * jax.random.normal(ks[3], (num_flows, d2, 1), jnp.float32)
    wtt = scale * jax.random.normal(ks[4], (num_flows, d2, hidden), jnp.float32)
    btt = scale * jax.random.normal(ks[5], (num_flows, d2, 1), jnp.float32)
    return {
        "w1t": w1t.astype(jnp.bfloat16),                                 # (K, H,    D2)
        "b1t": b1t,                                                      # (K, H,    1)
        "wstt": jnp.concatenate([wst, wtt], axis=1).astype(jnp.bfloat16),# (K, 2*D2, H)
        "bstt": jnp.concatenate([bst, btt], axis=1),                     # (K, 2*D2, 1)
    }


if __name__ == "__main__":
    # Feature-major activations (D, B): batch on lanes end-to-end, zero
    # per-call transposes. Keep B a multiple of 128.
    B, D, H, K = 256, 32, 64, 4          # batch, feature dim, hidden, num flows
    key = jax.random.PRNGKey(0)
    kz, kp = jax.random.split(key)
    zt = jax.random.normal(kz, (D, B), jnp.float32)
    params = init_params(kp, num_flows=K, dim=D, hidden=H)

    out = jax.block_until_ready(manager_forward(zt, params))   # tb=128, grid=(2,)
    ref = jax.block_until_ready(manager_forward_ref(zt, params))

    assert out.shape == (D, B) and out.dtype == jnp.float32
    # bf16-operand matmuls in the kernel vs f32 reference math -> loose tol.
    assert jnp.allclose(out, ref, atol=2e-2, rtol=2e-2), "mismatch vs reference"
    print("KERNEL_OK")
</pallas_src>

<mosaic_0001>
module attributes {stable_mosaic.version = 11 : i64} {
  func.func @manager_forward_kernel(%arg0: i32, %arg1: memref<32x128xf32, #tpu.memory_space<vmem>>, %arg2: memref<4x64x16xbf16, #tpu.memory_space<vmem>>, %arg3: memref<4x64x1xf32, #tpu.memory_space<vmem>>, %arg4: memref<4x32x64xbf16, #tpu.memory_space<vmem>>, %arg5: memref<4x32x1xf32, #tpu.memory_space<vmem>>, %arg6: memref<32x128xf32, #tpu.memory_space<vmem>>) attributes {dimension_semantics = [#tpu.dimension_semantics<parallel>], iteration_bounds = array<i64: 2>, scalar_prefetch = 0 : i64, scratch_operands = 0 : i64, tpu.core_type = #tpu.core_type<tc>, window_params = [{transform_indices = @transform_0, window_bounds = array<i64: 32, 128>}, {pipeline_mode = #tpu.pipeline_mode<synchronous>, transform_indices = @transform_1, window_bounds = array<i64: 4, 64, 16>}, {pipeline_mode = #tpu.pipeline_mode<synchronous>, transform_indices = @transform_2, window_bounds = array<i64: 4, 64, 1>}, {pipeline_mode = #tpu.pipeline_mode<synchronous>, transform_indices = @transform_3, window_bounds = array<i64: 4, 32, 64>}, {pipeline_mode = #tpu.pipeline_mode<synchronous>, transform_indices = @transform_4, window_bounds = array<i64: 4, 32, 1>}, {transform_indices = @transform_5, window_bounds = array<i64: 32, 128>}]} {
    %c0 = arith.constant 0 : index
    %c0_0 = arith.constant 0 : index
    %0 = vector.load %arg1[%c0, %c0_0] : memref<32x128xf32, #tpu.memory_space<vmem>>, vector<16x128xf32>
    %c16 = arith.constant 16 : index
    %c0_1 = arith.constant 0 : index
    %1 = vector.load %arg1[%c16, %c0_1] : memref<32x128xf32, #tpu.memory_space<vmem>>, vector<16x128xf32>
    %c0_2 = arith.constant 0 : index
    %c0_3 = arith.constant 0 : index
    %c0_4 = arith.constant 0 : index
    %2 = vector.load %arg2[%c0_2, %c0_3, %c0_4] : memref<4x64x16xbf16, #tpu.memory_space<vmem>>, vector<1x64x16xbf16>
    %3 = vector.shape_cast %2 : vector<1x64x16xbf16> to vector<64x16xbf16>
    %c0_5 = arith.constant 0 : index
    %c0_6 = arith.constant 0 : index
    %c0_7 = arith.constant 0 : index
    %4 = vector.load %arg3[%c0_5, %c0_6, %c0_7] : memref<4x64x1xf32, #tpu.memory_space<vmem>>, vector<1x64x1xf32>
    %5 = vector.shape_cast %4 : vector<1x64x1xf32> to vector<64x1xf32>
    %c0_8 = arith.constant 0 : index
    %c0_9 = arith.constant 0 : index
    %c0_10 = arith.constant 0 : index
    %6 = vector.load %arg4[%c0_8, %c0_9, %c0_10] : memref<4x32x64xbf16, #tpu.memory_space<vmem>>, vector<1x32x64xbf16>
    %7 = vector.shape_cast %6 : vector<1x32x64xbf16> to vector<32x64xbf16>
    %c0_11 = arith.constant 0 : index
    %c0_12 = arith.constant 0 : index
    %c0_13 = arith.constant 0 : index
    %8 = vector.load %arg5[%c0_11, %c0_12, %c0_13] : memref<4x32x1xf32, #tpu.memory_space<vmem>>, vector<1x32x1xf32>
    %9 = vector.shape_cast %8 : vector<1x32x1xf32> to vector<32x1xf32>
    %10 = arith.truncf %0 : vector<16x128xf32> to vector<16x128xbf16>
    %cst = arith.constant dense<0.000000e+00> : vector<64x128xf32>
    %11 = tpu.matmul %3, %10, %cst {dimension_numbers = #tpu.dot_dimension_numbers<[1], [0], [0], [1], [0, 0, 1, 1], [], []>} : vector<64x16xbf16>, vector<16x128xbf16>, vector<64x128xf32> -> vector<64x128xf32>
    %12 = vector.broadcast %5 : vector<64x1xf32> to vector<64x128xf32>
    %13 = arith.addf %11, %12 : vector<64x128xf32>
    %14 = math.tanh %13 : vector<64x128xf32>
    %15 = arith.truncf %14 : vector<64x128xf32> to vector<64x128xbf16>
    %cst_14 = arith.constant dense<0.000000e+00> : vector<32x128xf32>
    %16 = tpu.matmul %7, %15, %cst_14 {dimension_numbers = #tpu.dot_dimension_numbers<[1], [0], [0], [1], [0, 0, 1, 1], [], []>} : vector<32x64xbf16>, vector<64x128xbf16>, vector<32x128xf32> -> vector<32x128xf32>
    %17 = vector.broadcast %9 : vector<32x1xf32> to vector<32x128xf32>
    %18 = arith.addf %16, %17 : vector<32x128xf32>
    %19 = vector.extract_strided_slice %18 {offsets = [0, 0], sizes = [16, 128], strides = [1, 1]} : vector<32x128xf32> to vector<16x128xf32>
    %20 = math.tanh %19 : vector<16x128xf32>
    %21 = vector.extract_strided_slice %18 {offsets = [16, 0], sizes = [16, 128], strides = [1, 1]} : vector<32x128xf32> to vector<16x128xf32>
    %22 = math.exp %20 : vector<16x128xf32>
    %23 = arith.mulf %1, %22 : vector<16x128xf32>
    %24 = arith.addf %23, %21 : vector<16x128xf32>
    %c1 = arith.constant 1 : index
    %c0_15 = arith.constant 0 : index
    %c0_16 = arith.constant 0 : index
    %25 = vector.load %arg2[%c1, %c0_15, %c0_16] : memref<4x64x16xbf16, #tpu.memory_space<vmem>>, vector<1x64x16xbf16>
    %26 = vector.shape_cast %25 : vector<1x64x16xbf16> to vector<64x16xbf16>
    %c1_17 = arith.constant 1 : index
    %c0_18 = arith.constant 0 : index
    %c0_19 = arith.constant 0 : index
    %27 = vector.load %arg3[%c1_17, %c0_18, %c0_19] : memref<4x64x1xf32, #tpu.memory_space<vmem>>, vector<1x64x1xf32>
    %28 = vector.shape_cast %27 : vector<1x64x1xf32> to vector<64x1xf32>
    %c1_20 = arith.constant 1 : index
    %c0_21 = arith.constant 0 : index
    %c0_22 = arith.constant 0 : index
    %29 = vector.load %arg4[%c1_20, %c0_21, %c0_22] : memref<4x32x64xbf16, #tpu.memory_space<vmem>>, vector<1x32x64xbf16>
    %30 = vector.shape_cast %29 : vector<1x32x64xbf16> to vector<32x64xbf16>
    %c1_23 = arith.constant 1 : index
    %c0_24 = arith.constant 0 : index
    %c0_25 = arith.constant 0 : index
    %31 = vector.load %arg5[%c1_23, %c0_24, %c0_25] : memref<4x32x1xf32, #tpu.memory_space<vmem>>, vector<1x32x1xf32>
    %32 = vector.shape_cast %31 : vector<1x32x1xf32> to vector<32x1xf32>
    %33 = arith.truncf %24 : vector<16x128xf32> to vector<16x128xbf16>
    %cst_26 = arith.constant dense<0.000000e+00> : vector<64x128xf32>
    %34 = tpu.matmul %26, %33, %cst_26 {dimension_numbers = #tpu.dot_dimension_numbers<[1], [0], [0], [1], [0, 0, 1, 1], [], []>} : vector<64x16xbf16>, vector<16x128xbf16>, vector<64x128xf32> -> vector<64x128xf32>
    %35 = vector.broadcast %28 : vector<64x1xf32> to vector<64x128xf32>
    %36 = arith.addf %34, %35 : vector<64x128xf32>
    %37 = math.tanh %36 : vector<64x128xf32>
    %38 = arith.truncf %37 : vector<64x128xf32> to vector<64x128xbf16>
    %cst_27 = arith.constant dense<0.000000e+00> : vector<32x128xf32>
    %39 = tpu.matmul %30, %38, %cst_27 {dimension_numbers = #tpu.dot_dimension_numbers<[1], [0], [0], [1], [0, 0, 1, 1], [], []>} : vector<32x64xbf16>, vector<64x128xbf16>, vector<32x128xf32> -> vector<32x128xf32>
    %40 = vector.broadcast %32 : vector<32x1xf32> to vector<32x128xf32>
    %41 = arith.addf %39, %40 : vector<32x128xf32>
    %42 = vector.extract_strided_slice %41 {offsets = [0, 0], sizes = [16, 128], strides = [1, 1]} : vector<32x128xf32> to vector<16x128xf32>
    %43 = math.tanh %42 : vector<16x128xf32>
    %44 = vector.extract_strided_slice %41 {offsets = [16, 0], sizes = [16, 128], strides = [1, 1]} : vector<32x128xf32> to vector<16x128xf32>
    %45 = math.exp %43 : vector<16x128xf32>
    %46 = arith.mulf %0, %45 : vector<16x128xf32>
    %47 = arith.addf %46, %44 : vector<16x128xf32>
    %c2 = arith.constant 2 : index
    %c0_28 = arith.constant 0 : index
    %c0_29 = arith.constant 0 : index
    %48 = vector.load %arg2[%c2, %c0_28, %c0_29] : memref<4x64x16xbf16, #tpu.memory_space<vmem>>, vector<1x64x16xbf16>
    %49 = vector.shape_cast %48 : vector<1x64x16xbf16> to vector<64x16xbf16>
    %c2_30 = arith.constant 2 : index
    %c0_31 = arith.constant 0 : index
    %c0_32 = arith.constant 0 : index
    %50 = vector.load %arg3[%c2_30, %c0_31, %c0_32] : memref<4x64x1xf32, #tpu.memory_space<vmem>>, vector<1x64x1xf32>
    %51 = vector.shape_cast %50 : vector<1x64x1xf32> to vector<64x1xf32>
    %c2_33 = arith.constant 2 : index
    %c0_34 = arith.constant 0 : index
    %c0_35 = arith.constant 0 : index
    %52 = vector.load %arg4[%c2_33, %c0_34, %c0_35] : memref<4x32x64xbf16, #tpu.memory_space<vmem>>, vector<1x32x64xbf16>
    %53 = vector.shape_cast %52 : vector<1x32x64xbf16> to vector<32x64xbf16>
    %c2_36 = arith.constant 2 : index
    %c0_37 = arith.constant 0 : index
    %c0_38 = arith.constant 0 : index
    %54 = vector.load %arg5[%c2_36, %c0_37, %c0_38] : memref<4x32x1xf32, #tpu.memory_space<vmem>>, vector<1x32x1xf32>
    %55 = vector.shape_cast %54 : vector<1x32x1xf32> to vector<32x1xf32>
    %56 = arith.truncf %47 : vector<16x128xf32> to vector<16x128xbf16>
    %cst_39 = arith.constant dense<0.000000e+00> : vector<64x128xf32>
    %57 = tpu.matmul %49, %56, %cst_39 {dimension_numbers = #tpu.dot_dimension_numbers<[1], [0], [0], [1], [0, 0, 1, 1], [], []>} : vector<64x16xbf16>, vector<16x128xbf16>, vector<64x128xf32> -> vector<64x128xf32>
    %58 = vector.broadcast %51 : vector<64x1xf32> to vector<64x128xf32>
    %59 = arith.addf %57, %58 : vector<64x128xf32>
    %60 = math.tanh %59 : vector<64x128xf32>
    %61 = arith.truncf %60 : vector<64x128xf32> to vector<64x128xbf16>
    %cst_40 = arith.constant dense<0.000000e+00> : vector<32x128xf32>
    %62 = tpu.matmul %53, %61, %cst_40 {dimension_numbers = #tpu.dot_dimension_numbers<[1], [0], [0], [1], [0, 0, 1, 1], [], []>} : vector<32x64xbf16>, vector<64x128xbf16>, vector<32x128xf32> -> vector<32x128xf32>
    %63 = vector.broadcast %55 : vector<32x1xf32> to vector<32x128xf32>
    %64 = arith.addf %62, %63 : vector<32x128xf32>
    %65 = vector.extract_strided_slice %64 {offsets = [0, 0], sizes = [16, 128], strides = [1, 1]} : vector<32x128xf32> to vector<16x128xf32>
    %66 = math.tanh %65 : vector<16x128xf32>
    %67 = vector.extract_strided_slice %64 {offsets = [16, 0], sizes = [16, 128], strides = [1, 1]} : vector<32x128xf32> to vector<16x128xf32>
    %68 = math.exp %66 : vector<16x128xf32>
    %69 = arith.mulf %24, %68 : vector<16x128xf32>
    %70 = arith.addf %69, %67 : vector<16x128xf32>
    %c3 = arith.constant 3 : index
    %c0_41 = arith.constant 0 : index
    %c0_42 = arith.constant 0 : index
    %71 = vector.load %arg2[%c3, %c0_41, %c0_42] : memref<4x64x16xbf16, #tpu.memory_space<vmem>>, vector<1x64x16xbf16>
    %72 = vector.shape_cast %71 : vector<1x64x16xbf16> to vector<64x16xbf16>
    %c3_43 = arith.constant 3 : index
    %c0_44 = arith.constant 0 : index
    %c0_45 = arith.constant 0 : index
    %73 = vector.load %arg3[%c3_43, %c0_44, %c0_45] : memref<4x64x1xf32, #tpu.memory_space<vmem>>, vector<1x64x1xf32>
    %74 = vector.shape_cast %73 : vector<1x64x1xf32> to vector<64x1xf32>
    %c3_46 = arith.constant 3 : index
    %c0_47 = arith.constant 0 : index
    %c0_48 = arith.constant 0 : index
    %75 = vector.load %arg4[%c3_46, %c0_47, %c0_48] : memref<4x32x64xbf16, #tpu.memory_space<vmem>>, vector<1x32x64xbf16>
    %76 = vector.shape_cast %75 : vector<1x32x64xbf16> to vector<32x64xbf16>
    %c3_49 = arith.constant 3 : index
    %c0_50 = arith.constant 0 : index
    %c0_51 = arith.constant 0 : index
    %77 = vector.load %arg5[%c3_49, %c0_50, %c0_51] : memref<4x32x1xf32, #tpu.memory_space<vmem>>, vector<1x32x1xf32>
    %78 = vector.shape_cast %77 : vector<1x32x1xf32> to vector<32x1xf32>
    %79 = arith.truncf %70 : vector<16x128xf32> to vector<16x128xbf16>
    %cst_52 = arith.constant dense<0.000000e+00> : vector<64x128xf32>
    %80 = tpu.matmul %72, %79, %cst_52 {dimension_numbers = #tpu.dot_dimension_numbers<[1], [0], [0], [1], [0, 0, 1, 1], [], []>} : vector<64x16xbf16>, vector<16x128xbf16>, vector<64x128xf32> -> vector<64x128xf32>
    %81 = vector.broadcast %74 : vector<64x1xf32> to vector<64x128xf32>
    %82 = arith.addf %80, %81 : vector<64x128xf32>
    %83 = math.tanh %82 : vector<64x128xf32>
    %84 = arith.truncf %83 : vector<64x128xf32> to vector<64x128xbf16>
    %cst_53 = arith.constant dense<0.000000e+00> : vector<32x128xf32>
    %85 = tpu.matmul %76, %84, %cst_53 {dimension_numbers = #tpu.dot_dimension_numbers<[1], [0], [0], [1], [0, 0, 1, 1], [], []>} : vector<32x64xbf16>, vector<64x128xbf16>, vector<32x128xf32> -> vector<32x128xf32>
    %86 = vector.broadcast %78 : vector<32x1xf32> to vector<32x128xf32>
    %87 = arith.addf %85, %86 : vector<32x128xf32>
    %88 = vector.extract_strided_slice %87 {offsets = [0, 0], sizes = [16, 128], strides = [1, 1]} : vector<32x128xf32> to vector<16x128xf32>
    %89 = math.tanh %88 : vector<16x128xf32>
    %90 = vector.extract_strided_slice %87 {offsets = [16, 0], sizes = [16, 128], strides = [1, 1]} : vector<32x128xf32> to vector<16x128xf32>
    %91 = math.exp %89 : vector<16x128xf32>
    %92 = arith.mulf %47, %91 : vector<16x128xf32>
    %93 = arith.addf %92, %90 : vector<16x128xf32>
    %c0_54 = arith.constant 0 : index
    %c0_55 = arith.constant 0 : index
    %94 = vector.load %arg6[%c0_54, %c0_55] : memref<32x128xf32, #tpu.memory_space<vmem>>, vector<16x128xf32>
    tpu.vector_store %arg6[%c0_54, %c0_55], %93 {strides = array<i32>} : memref<32x128xf32, #tpu.memory_space<vmem>>, vector<16x128xf32>,
    %c16_56 = arith.constant 16 : index
    %c0_57 = arith.constant 0 : index
    %95 = vector.load %arg6[%c16_56, %c0_57] : memref<32x128xf32, #tpu.memory_space<vmem>>, vector<16x128xf32>
    tpu.vector_store %arg6[%c16_56, %c0_57], %70 {strides = array<i32>} : memref<32x128xf32, #tpu.memory_space<vmem>>, vector<16x128xf32>,
    return
  }
  func.func @transform_0(%arg0: i32) -> (i32, i32) {
    %c0_i32 = arith.constant 0 : i32
    %c0_i32_0 = arith.constant 0 : i32
    return %c0_i32, %arg0 : i32, i32
  }
  func.func @transform_1(%arg0: i32) -> (i32, i32, i32) {
    %c0_i32 = arith.constant 0 : i32
    %c0_i32_0 = arith.constant 0 : i32
    %c0_i32_1 = arith.constant 0 : i32
    %c0_i32_2 = arith.constant 0 : i32
    return %c0_i32, %c0_i32_0, %c0_i32_1 : i32, i32, i32
  }
  func.func @transform_2(%arg0: i32) -> (i32, i32, i32) {
    %c0_i32 = arith.constant 0 : i32
    %c0_i32_0 = arith.constant 0 : i32
    %c0_i32_1 = arith.constant 0 : i32
    %c0_i32_2 = arith.constant 0 : i32
    return %c0_i32, %c0_i32_0, %c0_i32_1 : i32, i32, i32
  }
  func.func @transform_3(%arg0: i32) -> (i32, i32, i32) {
    %c0_i32 = arith.constant 0 : i32
    %c0_i32_0 = arith.constant 0 : i32
    %c0_i32_1 = arith.constant 0 : i32
    %c0_i32_2 = arith.constant 0 : i32
    return %c0_i32, %c0_i32_0, %c0_i32_1 : i32, i32, i32
  }
  func.func @transform_4(%arg0: i32) -> (i32, i32, i32) {
    %c0_i32 = arith.constant 0 : i32
    %c0_i32_0 = arith.constant 0 : i32
    %c0_i32_1 = arith.constant 0 : i32
    %c0_i32_2 = arith.constant 0 : i32
    return %c0_i32, %c0_i32_0, %c0_i32_1 : i32, i32, i32
  }
  func.func @transform_5(%arg0: i32) -> (i32, i32) {
    %c0_i32 = arith.constant 0 : i32
    %c0_i32_0 = arith.constant 0 : i32
    return %c0_i32, %arg0 : i32, i32
  }
}

</mosaic_0001>

<bundles_post_ra>
// kernel: tpu_custom_call.1
= control target key start
LH: loop header
LB: loop body
LE: loop exit
PB: predicated region body
PF: predicated region fallthrough
CT: control target
= control target key end

     0   :  { %10 = vsyncpa [#allocation4], 0  ;;  %s2370_s0 = inlined_call_operand.vmem [shape: f32[32,256], index: 0, kind: input, shape index: {}]   ;;  %s2371_s1 = inlined_call_operand.vmem [shape: bf16[4,64,16], index: 1, kind: input, shape index: {}]   ;;  %s2372_s2 = inlined_call_operand.vmem [shape: f32[4,64,1], index: 2, kind: input, shape index: {}]   ;;  %s2373_s3 = inlined_call_operand.vmem [shape: bf16[4,32,64], index: 3, kind: input, shape index: {}]   ;;  %s2374_s4 = inlined_call_operand.vmem [shape: f32[4,32,1], index: 4, kind: input, shape index: {}]   ;;  %s2375_s5 = inlined_call_operand.hbm [shape: f32[32,256], index: 5, kind: output, shape index: {}]  }
   0x1   :  { %12 = vsyncpa [#allocation4 + $0x1], 0  ;;  %s1977_s18 = smov 0   ;;  %s1979_s19 = smov 0  }
   0x2   :  { %s1981_s20 = smov 0   ;;  %s1983_s21 = smov 0  }
   0x3 LB: > { %s1448_s22 = sadd.s32 4294967295, %s1940_s21   ;;  %s1449_s23 = sadd.s32 4294967294, %s1940_s21   ;;  %s1940_s21 = sphi %s1983_s21, %s2381_s21   ;;  %s1936_s20 = sphi %s1981_s20, %s2380_s20   ;;  %s1932_s19 = sphi %s1979_s19, %s2379_s19   ;;  %s1928_s18 = sphi %s1977_s18, %s2378_s18  }
   0x4   : > { %s2000_s24 = sadd.s32 1, %s1940_s21   ;;  %s25_s25 = sadd.s32 1, %s1936_s20 }
   0x5   : > { %s22_s26 = ssub.s32 %s1940_s21, %s2000_s24  ;;  %p32_p0 = scmp.ne.s32.totalorder %s1936_s20, %s1932_s19 }
   0x6   : > { %p23_p1 = scmp.eq.s32.totalorder %s22_s26, 0  ;;  %p33_p2 = scmp.eq.s32.totalorder %s1940_s21, 0 }
   0x7   : > { %p146_p3 = scmp.eq.s32.totalorder %s1448_s22, 1  ;;  %p151_p4 = scmp.ne.s32.totalorder %s1932_s19, %s1928_s18 }
   0x8   : > { %s2013_s27 = scalar_select %p23_p1, %s1936_s20, %s25_s25  }
   0x9   : > { %p34_p5 = por %p33_p2, %p32_p0  ;;  %p2015_p6 = por %p146_p3, %p32_p0 }
   0xa   : > { %p152_p7 = scmp.eq.s32.totalorder %s1449_s23, 1  ;;  %p1451_p9 = scmp.ge.s32.totalorder %s1940_s21, 2 }
   0xc   : > { %p2019_p8 = por %p152_p7, %p151_p4  ;;  %180 = sbr.rel (%p1451_p9) target bundleno = 26 (0x1a), region = 32 }
  0x13   : > { %183 = sbr.rel (!%p34_p5) target bundleno = 26 (0x1a), region = 36  ;;  %s185_s30 = sand.u32 (%p34_p5), 1, %s1936_s20  }
  0x14   : > { %s1453_s6 = sshll.u32 (%p34_p5), %s1940_s21, 3  ;;  %s1452_s7 = sshll.u32 (%p34_p5), %s185_s30, 5 }
  0x15   : > { %s189_s10 = scalar_lea.vmem (%p34_p5), %s2370_s0, %s1453_s6  ;;  %s187_s11 = scalar_lea.vmem (%p34_p5), [#allocation2], %s1452_s7 }
  0x16   : > { %v223_v0 = vld [vmem:[%s189_s10] sm:$0xff] (%p34_p5)  ;;  %v225_v1 = vld [vmem:[%s189_s10 + $0x10] sm:$0xff] (%p34_p5) }
  0x17   : > { %v227_v2 = vld [vmem:[%s189_s10 + $0x20] sm:$0xff] (%p34_p5)  ;;  %224 = vst [vmem:[%s187_s11] sm:$0xff] (%p34_p5), %v223_v0  ;;  %226 = vst [vmem:[%s187_s11 + $0x8] sm:$0xff] (%p34_p5), %v225_v1  ;;  %v229_v3 = vld [vmem:[%s189_s10 + $0x30] sm:$0xff] (%p34_p5) }
  0x18   : > { %228 = vst [vmem:[%s187_s11 + $0x10] sm:$0xff] (%p34_p5), %v227_v2  ;;  %230 = vst [vmem:[%s187_s11 + $0x18] sm:$0xff] (%p34_p5), %v229_v3 }
  0x1a PF: > { %p1454_p10 = scmp.ge.s32.totalorder %s1940_s21, 1  ;;  %p235_p11 = scmp.lt.s32.totalorder %s1940_s21, 3 }
  0x1c   : > { %p236_p12 = pnand %p1454_p10, %p235_p11 }
  0x1d   : > { %v282_v4 = vld [vmem:[%s2372_s2] sm:$0xff] (!%p236_p12)  ;;  %v284_v5 = vld [vmem:[%s2372_s2 + $0x10] sm:$0xff] (!%p236_p12)  ;;  %s242_s16 = sand.u32 (!%p236_p12), 1, %s1932_s19   ;;  %vm359_vm0 = vcmask (!%p236_p12), 130048   ;;  %v1942_v6 = vmov (!%p236_p12), 0   ;;  %v283_v8 = vld [vmem:[%s2372_s2 + $0x8] sm:$0xff] (!%p236_p12) }
  0x1e   : > { %239 = sbr.rel (%p236_p12) target bundleno = 2037 (0x7f5), region = 74  ;;  %1756 = vset.pattern.permute.xlu0 (!%p236_p12), %v1942_v6  ;;  %1757 = vset.pattern.permute.xlu1 (!%p236_p12), %v1942_v6  ;;  %s2042_s17 = sshll.u32 (!%p236_p12), %s242_s16, 5  ;;  %v1758_v7 = vld [vmem:[%s2371_s1] sm:$0xff] (!%p236_p12)   ;;  %v285_v12 = vld [vmem:[%s2372_s2 + $0x18] sm:$0xff] (!%p236_p12)  ;;  %v1759_v13 = vld [vmem:[%s2371_s1 + $0x8] sm:$0xff] (!%p236_p12)   ;;  %vm479_vm1 = vcmask (!%p236_p12), 523264  }
  0x1f   : > { %301 = vperm.xlu0 (!%p236_p12), %1756, %v282_v4   ;;  %311 = vperm.xlu1 (!%p236_p12), %1757, %v284_v5   ;;  %s2051_s6 = scalar_lea.vmem (!%p236_p12), [#allocation2], %s2042_s17  ;;  %v286_v14 = vld [vmem:[%s2372_s2 + $0x20] sm:$0xff] (!%p236_p12)  ;;  %v1760_v15 = vld [vmem:[%s2371_s1 + $0x10] sm:$0xff] (!%p236_p12)   ;;  %v287_v16 = vld [vmem:[%s2372_s2 + $0x28] sm:$0xff] (!%p236_p12)  ;;  %s2288_s14 = scalar_lea.vmem (!%p236_p12), [#allocation3], %s2042_s17 }
  0x20   : > { %v2054_v9 = vld [vmem:[%s2051_s6] sm:$0xff] (!%p236_p12)  ;;  %v2057_v10 = vld [vmem:[%s2051_s6 + $0x8] sm:$0xff] (!%p236_p12)  ;;  %1627 = vmatprep.mubr.msk.bf16.mxu0 (!%p236_p12), %vm359_vm0, %v1758_v7  ;;  %v288_v17 = vld [vmem:[%s2372_s2 + $0x30] sm:$0xff] (!%p236_p12)  ;;  %s1381_s10 = sshll.u32 (!%p236_p12), %s2288_s14, 4  ;;  %s1578_s11 = sshll.u32 (!%p236_p12), %s1448_s22, 7  ;;  %s2316_s10 = int_to_ptr.vmem [resolvable:$true] %s1381_s10 }
  0x21   : > { %v298_v11 = vpack.c.bf16 (!%p236_p12), %v2057_v10, %v2054_v9  ;;  %v289_v18 = vld [vmem:[%s2372_s2 + $0x38] sm:$0xff] (!%p236_p12)  ;;  %v294_v20 = vld [vmem:[%s2374_s4] sm:$0xff] (!%p236_p12)  ;;  %v295_v21 = vld [vmem:[%s2374_s4 + $0x8] sm:$0xff] (!%p236_p12)  ;;  %s2322_s15 = scalar_lea.hbm (!%p236_p12), %s2375_s5, %s1578_s11  ;;  %s2328_s22 = scalar_lea.sflag (!%p236_p12), [#allocation4], %s242_s16 }
  0x22   : > { %v1761_v19 = vld [vmem:[%s2371_s1 + $0x18] sm:$0xff] (!%p236_p12)   ;;  %v296_v22 = vld [vmem:[%s2374_s4 + $0x10] sm:$0xff] (!%p236_p12)  ;;  %v1477_v24 = vld [vmem:[%s2372_s2 + $0x40] sm:$0xff] (!%p236_p12)  ;;  %s1878_s23 = scalar_lea.vmem (!%p236_p12), %s2316_s10, 512  ;;  %s1943_s25 = smov (!%p236_p12), [#allocation3]  }
  0x23   : > { %306 = vperm.xlu0 (!%p236_p12), %1756, %v283_v8   ;;  %1625 = vmatprep.subr.bf16.mxu0 (!%p236_p12), %v298_v11  ;;  %v297_v23 = vld [vmem:[%s2374_s4 + $0x18] sm:$0xff] (!%p236_p12)  ;;  %v1478_v25 = vld [vmem:[%s2372_s2 + $0x48] sm:$0xff] (!%p236_p12)  ;;  %v1479_v26 = vld [vmem:[%s2372_s2 + $0x50] sm:$0xff] (!%p236_p12)  ;;  %p1879_p13 = scmp.ne.s32.totalorder (!%p236_p12), %s2316_s10, %s1878_s23  ;;  %s1882_s26 = sshll.u32 (!%p236_p12), %s1943_s25, 4  ;;  %s1883_s26 = int_to_ptr.vmem [resolvable:$false] %s1882_s26 }
  0x24   : > { %1626 = vmatpush3.bf16.msra.mxu0 (!%p236_p12), %v298_v11  ;;  %316 = vperm.xlu1 (!%p236_p12), %1757, %v285_v12   ;;  %v1480_v27 = vld [vmem:[%s2372_s2 + $0x58] sm:$0xff] (!%p236_p12)  ;;  %v1481_v28 = vld [vmem:[%s2372_s2 + $0x60] sm:$0xff] (!%p236_p12)  ;;  %v1482_v29 = vld [vmem:[%s2372_s2 + $0x68] sm:$0xff] (!%p236_p12)  ;;  %s1884_s17 = scalar_lea.vmem (!%p236_p12), %s1883_s26, 1024  ;;  %p1885_p2 = scmp.lt.s32.totalorder (!%p236_p12), %s2316_s10, %s1883_s26 }
  0x25   : > { %v1483_v30 = vld [vmem:[%s2372_s2 + $0x70] sm:$0xff]  ;;  %v1484_v31 = vld [vmem:[%s2372_s2 + $0x78] sm:$0xff]  ;;  %v1489_v32 = vld [vmem:[%s2374_s4 + $0x20] sm:$0xff]  ;;  %p1880_p0 = pnand %p1879_p13, %p2015_p6  ;;  %p1886_p3 = scmp.lt.s32.totalorder %s1884_s17, %s1878_s23 }
  0x26   : > { %v1490_v33 = vld [vmem:[%s2374_s4 + $0x28] sm:$0xff]  ;;  %v1491_v34 = vld [vmem:[%s2374_s4 + $0x30] sm:$0xff]  ;;  %v1492_v35 = vld [vmem:[%s2374_s4 + $0x38] sm:$0xff] }
  0x27   : > { %321 = vperm.xlu0 %1756, %v286_v14   ;;  %1628 = vmatmul.mubr.msk.bf16.vlgmr.msra.gmra.mrb[0].mxu0 %vm359_vm0, %v1759_v13  ;;  %v1513_v36 = vld [vmem:[%s2372_s2 + $0x80] sm:$0xff]  ;;  %v1514_v37 = vld [vmem:[%s2372_s2 + $0x88] sm:$0xff]  ;;  %v1515_v38 = vld [vmem:[%s2372_s2 + $0x90] sm:$0xff]  ;;  %p1881_p1 = pneg %p1880_p0  ;;  %p1887_p4 = por %p1886_p3, %p1885_p2 }
  0x28   : > { %326 = vperm.xlu1 %1757, %v287_v16   ;;  %1631 = vmatprep.mubr.msk.bf16.mxu0 %vm359_vm0, %v1760_v15  ;;  %v1516_v39 = vld [vmem:[%s2372_s2 + $0x98] sm:$0xff]  ;;  %v1517_v40 = vld [vmem:[%s2372_s2 + $0xa0] sm:$0xff]  ;;  %v1518_v41 = vld [vmem:[%s2372_s2 + $0xa8] sm:$0xff] }
  0x29   : > { %v1519_v42 = vld [vmem:[%s2372_s2 + $0xb0] sm:$0xff]  ;;  %v1520_v43 = vld [vmem:[%s2372_s2 + $0xb8] sm:$0xff]  ;;  %v1525_v44 = vld [vmem:[%s2374_s4 + $0x40] sm:$0xff]  ;;  %p1888_p5 = pnand %p1887_p4, %p1881_p1 }
  0x2a   : > { %v1526_v45 = vld [vmem:[%s2374_s4 + $0x48] sm:$0xff]  ;;  %v1527_v46 = vld [vmem:[%s2374_s4 + $0x50] sm:$0xff]  ;;  %v1528_v47 = vld [vmem:[%s2374_s4 + $0x58] sm:$0xff] }
  0x2b   : > { %331 = vperm.xlu0 %1756, %v288_v17   ;;  %v1549_v48 = vld [vmem:[%s2372_s2 + $0xc0] sm:$0xff]  ;;  %v1550_v49 = vld [vmem:[%s2372_s2 + $0xc8] sm:$0xff]  ;;  %v1551_v50 = vld [vmem:[%s2372_s2 + $0xd0] sm:$0xff] }
  0x2c   : > { %336 = vperm.xlu1 %1757, %v289_v18   ;;  %v1552_v51 = vld [vmem:[%s2372_s2 + $0xd8] sm:$0xff]  ;;  %v1553_v52 = vld [vmem:[%s2372_s2 + $0xe0] sm:$0xff]  ;;  %v1554_v53 = vld [vmem:[%s2372_s2 + $0xe8] sm:$0xff] }
  0x2d   : > { %v1555_v54 = vld [vmem:[%s2372_s2 + $0xf0] sm:$0xff]  ;;  %v1556_v55 = vld [vmem:[%s2372_s2 + $0xf8] sm:$0xff]  ;;  %v1561_v56 = vld [vmem:[%s2374_s4 + $0x60] sm:$0xff] }
  0x2e   : > { %v1562_v57 = vld [vmem:[%s2374_s4 + $0x68] sm:$0xff]  ;;  %v1563_v58 = vld [vmem:[%s2374_s4 + $0x70] sm:$0xff]  ;;  %v1564_v59 = vld [vmem:[%s2374_s4 + $0x78] sm:$0xff] }
  0x2f   : > { %451 = vperm.xlu0 %1756, %v294_v20   ;;  %1632 = vmatmul.mubr.msk.bf16.gmra.mrb[4].mxu0 %vm359_vm0, %v1761_v19  ;;  %v1762_v60 = vld [vmem:[%s2373_s3] sm:$0xff]  }
  0x30   : > { %456 = vperm.xlu1 %1757, %v295_v21   ;;  %1643 = vmatprep.mubr.msk.bf16.mxu1 %vm479_vm1, %v1762_v60 }
  0x33   : > { %461 = vperm.xlu0 %1756, %v296_v22  }
  0x34   : > { %466 = vperm.xlu1 %1757, %v297_v23  }
  0x37   : > { %576 = vperm.xlu0 %1756, %v1477_v24  }
  0x38   : > { %581 = vperm.xlu1 %1757, %v1478_v25  }
  0x3b   : > { %586 = vperm.xlu0 %1756, %v1479_v26  }
  0x3c   : > { %591 = vperm.xlu1 %1757, %v1480_v27  }
  0x3f   : > { %596 = vperm.xlu0 %1756, %v1481_v28  }
  0x40   : > { %601 = vperm.xlu1 %1757, %v1482_v29  }
  0x43   : > { %606 = vperm.xlu0 %1756, %v1483_v30  }
  0x44   : > { %611 = vperm.xlu1 %1757, %v1484_v31  }
  0x47   : > { %725 = vperm.xlu0 %1756, %v1489_v32  }
  0x48   : > { %730 = vperm.xlu1 %1757, %v1490_v33  }
  0x4b   : > { %735 = vperm.xlu0 %1756, %v1491_v34  }
  0x4c   : > { %740 = vperm.xlu1 %1757, %v1492_v35   ;;  %v1763_v35 = vld [vmem:[%s2373_s3 + $0x8] sm:$0xff]  }
  0x4f   : > { %849 = vperm.xlu0 %1756, %v1513_v36   ;;  %v1764_v36 = vld [vmem:[%s2371_s1 + $0x20] sm:$0xff]  }
  0x50   : > { %854 = vperm.xlu1 %1757, %v1514_v37   ;;  %1649 = vmatprep.mubr.msk.bf16.mxu0 %vm359_vm0, %v1764_v36 }
  0x53   : > { %859 = vperm.xlu0 %1756, %v1515_v38  }
  0x54   : > { %864 = vperm.xlu1 %1757, %v1516_v39  }
  0x57   : > { %869 = vperm.xlu0 %1756, %v1517_v40  }
  0x58   : > { %874 = vperm.xlu1 %1757, %v1518_v41  }
  0x5b   : > { %879 = vperm.xlu0 %1756, %v1519_v42  }
  0x5c   : > { %884 = vperm.xlu1 %1757, %v1520_v43  }
  0x5f   : > { %998 = vperm.xlu0 %1756, %v1525_v44  }
  0x60   : > { %1003 = vperm.xlu1 %1757, %v1526_v45  }
  0x63   : > { %1008 = vperm.xlu0 %1756, %v1527_v46  }
  0x64   : > { %1013 = vperm.xlu1 %1757, %v1528_v47  }
  0x67   : > { %1122 = vperm.xlu0 %1756, %v1549_v48  }
  0x68   : > { %1127 = vperm.xlu1 %1757, %v1550_v49   ;;  %v272_v49 = vld [vmem:[%s2051_s6 + $0x10] sm:$0xff] }
  0x6b   : > { %1132 = vperm.xlu0 %1756, %v1551_v50  }
  0x6c   : > { %1137 = vperm.xlu1 %1757, %v1552_v51  }
  0x6f   : > { %1142 = vperm.xlu0 %1756, %v1553_v52   ;;  %v273_v52 = vld [vmem:[%s2051_s6 + $0x18] sm:$0xff] }
  0x70   : > { %1147 = vperm.xlu1 %1757, %v1554_v53  }
  0x73   : > { %1152 = vperm.xlu0 %1756, %v1555_v54  }
  0x74   : > { %1157 = vperm.xlu1 %1757, %v1556_v55  }
  0x77   : > { %1271 = vperm.xlu0 %1756, %v1561_v56  }
  0x78   : > { %1276 = vperm.xlu1 %1757, %v1562_v57  }
  0x7b   : > { %1281 = vperm.xlu0 %1756, %v1563_v58  }
  0x7c   : > { %1286 = vperm.xlu1 %1757, %v1564_v59  }
  0x9e   : > { %v302_v61 = vpop.permute.xlu0 %301  ;;  %v312_v62 = vpop.permute.xlu1 %311 }
  0xa2   : > { %v307_v63 = vpop.permute.xlu0 %306 }
  0xa3   : > { %v317_v0 = vpop.permute.xlu1 %316 }
  0xa6   : > { %v322_v4 = vpop.permute.xlu0 %321 }
  0xa7   : > { %v327_v11 = vpop.permute.xlu1 %326 }
  0xaa   : > { %v332_v13 = vpop.permute.xlu0 %331 }
  0xab   : > { %v337_v17 = vpop.permute.xlu1 %336 }
  0xae   : > { %v452_v38 = vpop.permute.xlu0 %451 }
  0xaf   : > { %v457_v42 = vpop.permute.xlu1 %456 }
  0xb2   : > { %v462_v51 = vpop.permute.xlu0 %461 }
  0xb3   : > { %v467_v56 = vpop.permute.xlu1 %466 }
  0xfa   : > { %v1629_v1 = vpop.f32.mrb[0].mxu0 }
  0xfb   : > { %v415_v2 = vadd.f32 %v1629_v1, %v312_v62  ;;  %v406_v3 = vpop.f32.mrb[1].mxu0  ;;  %v1765_v62 = vld [vmem:[%s2371_s1 + $0x28] sm:$0xff]   ;;  %v1768_v1 = vld [vmem:[%s2373_s3 + $0x10] sm:$0xff]  }
  0xfc   : > { %v407_v5 = vadd.f32 %v406_v3, %v302_v61  ;;  %v1630_v6 = vpop.f32.mrb[2].mxu0  ;;  %v582_v3 = vpop.permute.xlu1 %581 }
  0xfd   : > { %1782 = vtanh.f32 %v415_v2  ;;  %v418_v7 = vadd.f32 %v1630_v6, %v317_v0  ;;  %v409_v8 = vpop.f32.mrb[3].mxu0  ;;  %v1767_v0 = vld [vmem:[%s2371_s1 + $0x38] sm:$0xff]   ;;  %v577_v2 = vpop.permute.xlu0 %576 }
  0xfe   : > { %1784 = vtanh.f32 %v407_v5  ;;  %v410_v12 = vadd.f32 %v409_v8, %v307_v63  ;;  %v1766_v63 = vld [vmem:[%s2371_s1 + $0x30] sm:$0xff]  }
  0xff   : > { %1786 = vtanh.f32 %v418_v7 }
 0x100   : > { %1788 = vtanh.f32 %v410_v12  ;;  %v592_v5 = vpop.permute.xlu1 %591 }
 0x102   : > { %v1633_v14 = vpop.f32.mrb[4].mxu0 }
 0x103   : > { %v431_v15 = vadd.f32 %v1633_v14, %v332_v13  ;;  %v422_v16 = vpop.f32.mrb[5].mxu0 }
 0x104   : > { %v423_v18 = vadd.f32 %v422_v16, %v322_v4  ;;  %v1634_v19 = vpop.f32.mrb[6].mxu0  ;;  %v587_v4 = vpop.permute.xlu0 %586 }
 0x105   : > { %1790 = vtanh.f32 %v431_v15  ;;  %v434_v20 = vadd.f32 %v1634_v19, %v337_v17  ;;  %v425_v21 = vpop.f32.mrb[7].mxu0  ;;  %v602_v16 = vpop.permute.xlu1 %601 }
 0x106   : > { %1792 = vtanh.f32 %v423_v18  ;;  %v426_v22 = vadd.f32 %v425_v21, %v327_v11 }
 0x107   : > { %v1783_v23 = vpop.eup %1782  ;;  %1794 = vtanh.f32 %v434_v20 }
 0x108   : > { %v1785_v24 = vpop.eup %1784  ;;  %1796 = vtanh.f32 %v426_v22  ;;  %v597_v11 = vpop.permute.xlu0 %596 }
 0x109   : > { %v1787_v25 = vpop.eup %1786  ;;  %v612_v22 = vpop.permute.xlu1 %611 }
 0x10a   : > { %v1789_v26 = vpop.eup %1788  ;;  %v446_v27 = vpack.c.bf16 %v1787_v25, %v1783_v23 }
 0x10b   : > { %v445_v28 = vpack.c.bf16 %v1789_v26, %v1785_v24 }
 0x10c   : > { %v607_v18 = vpop.permute.xlu0 %606 }
 0x10d   : > { %1635 = vmatprep.subr.bf16.mxu1 %v445_v28 }
 0x10e   : > { %1636 = vmatpush3.bf16.msra.mxu1 %v445_v28 }
 0x10f   : > { %v1791_v29 = vpop.eup %1790  ;;  %1637 = vmatprep.subr.bf16.mxu1 %v446_v27 }
 0x110   : > { %v1793_v30 = vpop.eup %1792 }
 0x111   : > { %v1795_v31 = vpop.eup %1794 }
 0x112   : > { %v1797_v32 = vpop.eup %1796  ;;  %1638 = vmatpush3.bf16.msra.mxu1 %v446_v27  ;;  %v448_v33 = vpack.c.bf16 %v1795_v31, %v1791_v29 }
 0x113   : > { %v447_v34 = vpack.c.bf16 %v1797_v32, %v1793_v30 }
 0x115   : > { %1639 = vmatprep.subr.bf16.mxu1 %v447_v34 }
 0x116   : > { %1640 = vmatpush3.bf16.msra.mxu1 %v447_v34 }
 0x117   : > { %1641 = vmatprep.subr.bf16.mxu1 %v448_v33 }
 0x11a   : > { %1642 = vmatpush3.bf16.msra.mxu1 %v448_v33 }
 0x11d   : > { %1644 = vmatmul.mubr.msk.bf16.vlgmr.msra.gmra.mrb[0].mxu1 %vm479_vm1, %v1763_v35 }
 0x11e   : > { %1665 = vmatprep.mubr.msk.bf16.mxu1 %vm479_vm1, %v1768_v1 }
 0x1f0   : > { %v1645_v37 = vpop.f32.mrb[0].mxu1 }
 0x1f1   : > { %v520_v39 = vpop.f32.mrb[1].mxu1  ;;  %v529_v53 = vadd.f32 %v1645_v37, %v462_v51 }
 0x1f2   : > { %v521_v40 = vadd.f32 %v520_v39, %v452_v38  ;;  %v1646_v41 = vpop.f32.mrb[2].mxu1 }
 0x1f3   : > { %v523_v43 = vpop.f32.mrb[3].mxu1  ;;  %v532_v57 = vadd.f32 %v1646_v41, %v467_v56  ;;  %v1770_v41 = vld [vmem:[%s2371_s1 + $0x40] sm:$0xff]  }
 0x1f4   : > { %1798 = vtanh.f32 %v521_v40  ;;  %v524_v44 = vadd.f32 %v523_v43, %v457_v42  ;;  %v1769_v40 = vld [vmem:[%s2373_s3 + $0x18] sm:$0xff]   ;;  %v726_v43 = vpop.permute.xlu0 %725 }
 0x1f6   : > { %1800 = vtanh.f32 %v524_v44 }
 0x1fe   : > { %v1799_v45 = vpop.eup %1798 }
 0x1ff   : > { %v537_v46 = vmul.f32 1.442695, %v1799_v45 }
 0x200   : > { %v1801_v47 = vpop.eup %1800 }
 0x201   : > { %1802 = vpow2.f32 %v537_v46  ;;  %v539_v48 = vmul.f32 1.442695, %v1801_v47  ;;  %v731_v47 = vpop.permute.xlu1 %730 }
 0x203   : > { %1804 = vpow2.f32 %v539_v48 }
 0x20b   : > { %v1803_v50 = vpop.eup %1802 }
 0x20c   : > { %v541_v54 = vmul.f32 %v1803_v50, %v272_v49 }
 0x20d   : > { %v1805_v55 = vpop.eup %1804 }
 0x20e   : > { %v542_v58 = vmul.f32 %v1805_v55, %v273_v52  ;;  %v2223_v59 = vadd.f32 %v541_v54, %v529_v53  ;;  %v736_v55 = vpop.permute.xlu0 %735 }
 0x210   : > { %v2225_v60 = vadd.f32 %v542_v58, %v532_v57 }
 0x212   : > { %v573_v61 = vpack.c.bf16 %v2225_v60, %v2223_v59 }
 0x214   : > { %1647 = vmatprep.subr.bf16.mxu0 %v573_v61 }
 0x215   : > { %1648 = vmatpush3.bf16.msra.mxu0 %v573_v61  ;;  %v741_v61 = vpop.permute.xlu1 %740 }
 0x218   : > { %1650 = vmatmul.mubr.msk.bf16.vlgmr.msra.gmra.mrb[8].mxu0 %vm359_vm0, %v1765_v62 }
 0x219   : > { %1653 = vmatprep.mubr.msk.bf16.mxu0 %vm359_vm0, %v1766_v63 }
 0x220   : > { %1654 = vmatmul.mubr.msk.bf16.gmra.mrb[12].mxu0 %vm359_vm0, %v1767_v0 }
 0x221   : > { %1671 = vmatprep.mubr.msk.bf16.mxu0 %vm359_vm0, %v1770_v41 }
 0x2eb   : > { %v1651_v6 = vpop.f32.mrb[8].mxu0 }
 0x2ec   : > { %v689_v7 = vadd.f32 %v1651_v6, %v587_v4  ;;  %v680_v8 = vpop.f32.mrb[9].mxu0  ;;  %v1774_v4 = vld [vmem:[%s2373_s3 + $0x20] sm:$0xff]   ;;  %v855_v6 = vpop.permute.xlu1 %854 }
 0x2ed   : > { %v681_v12 = vadd.f32 %v680_v8, %v577_v2  ;;  %v1652_v13 = vpop.f32.mrb[10].mxu0 }
 0x2ee   : > { %1806 = vtanh.f32 %v689_v7  ;;  %v692_v14 = vadd.f32 %v1652_v13, %v592_v5  ;;  %v683_v15 = vpop.f32.mrb[11].mxu0  ;;  %v850_v5 = vpop.permute.xlu0 %849 }
 0x2ef   : > { %1808 = vtanh.f32 %v681_v12  ;;  %v684_v17 = vadd.f32 %v683_v15, %v582_v3  ;;  %v1771_v3 = vld [vmem:[%s2371_s1 + $0x48] sm:$0xff]  }
 0x2f0   : > { %1810 = vtanh.f32 %v692_v14  ;;  %v865_v8 = vpop.permute.xlu1 %864 }
 0x2f1   : > { %1812 = vtanh.f32 %v684_v17 }
 0x2f2   : > { %v860_v7 = vpop.permute.xlu0 %859 }
 0x2f3   : > { %v1655_v19 = vpop.f32.mrb[12].mxu0 }
 0x2f4   : > { %v705_v20 = vadd.f32 %v1655_v19, %v607_v18  ;;  %v696_v21 = vpop.f32.mrb[13].mxu0  ;;  %v875_v19 = vpop.permute.xlu1 %874 }
 0x2f5   : > { %v697_v23 = vadd.f32 %v696_v21, %v597_v11  ;;  %v1656_v24 = vpop.f32.mrb[14].mxu0 }
 0x2f6   : > { %1814 = vtanh.f32 %v705_v20  ;;  %v708_v25 = vadd.f32 %v1656_v24, %v612_v22  ;;  %v699_v26 = vpop.f32.mrb[15].mxu0  ;;  %v870_v14 = vpop.permute.xlu0 %869 }
 0x2f7   : > { %1816 = vtanh.f32 %v697_v23  ;;  %v700_v27 = vadd.f32 %v699_v26, %v602_v16 }
 0x2f8   : > { %v1807_v28 = vpop.eup %1806  ;;  %1818 = vtanh.f32 %v708_v25  ;;  %v885_v25 = vpop.permute.xlu1 %884 }
 0x2f9   : > { %v1809_v29 = vpop.eup %1808  ;;  %1820 = vtanh.f32 %v700_v27 }
 0x2fa   : > { %v1811_v30 = vpop.eup %1810  ;;  %v880_v21 = vpop.permute.xlu0 %879 }
 0x2fb   : > { %v1813_v31 = vpop.eup %1812  ;;  %v720_v32 = vpack.c.bf16 %v1811_v30, %v1807_v28 }
 0x2fc   : > { %v719_v33 = vpack.c.bf16 %v1813_v31, %v1809_v29 }
 0x2fe   : > { %1657 = vmatprep.subr.bf16.mxu1 %v719_v33 }
 0x2ff   : > { %1658 = vmatpush3.bf16.msra.mxu1 %v719_v33 }
 0x300   : > { %v1815_v34 = vpop.eup %1814  ;;  %1659 = vmatprep.subr.bf16.mxu1 %v720_v32 }
 0x301   : > { %v1817_v35 = vpop.eup %1816 }
 0x302   : > { %v1819_v36 = vpop.eup %1818 }
 0x303   : > { %v1821_v37 = vpop.eup %1820  ;;  %1660 = vmatpush3.bf16.msra.mxu1 %v720_v32  ;;  %v722_v38 = vpack.c.bf16 %v1819_v36, %v1815_v34 }
 0x304   : > { %v721_v39 = vpack.c.bf16 %v1821_v37, %v1817_v35 }
 0x306   : > { %1661 = vmatprep.subr.bf16.mxu1 %v721_v39 }
 0x307   : > { %1662 = vmatpush3.bf16.msra.mxu1 %v721_v39 }
 0x308   : > { %1663 = vmatprep.subr.bf16.mxu1 %v722_v38 }
 0x30b   : > { %1664 = vmatpush3.bf16.msra.mxu1 %v722_v38 }
 0x30e   : > { %1666 = vmatmul.mubr.msk.bf16.vlgmr.msra.gmra.mrb[4].mxu1 %vm479_vm1, %v1769_v40 }
 0x30f   : > { %1687 = vmatprep.mubr.msk.bf16.mxu1 %vm479_vm1, %v1774_v4 }
 0x3e1   : > { %v1667_v42 = vpop.f32.mrb[4].mxu1 }
 0x3e2   : > { %v793_v44 = vpop.f32.mrb[5].mxu1  ;;  %v802_v56 = vadd.f32 %v1667_v42, %v736_v55 }
 0x3e3   : > { %v794_v45 = vadd.f32 %v793_v44, %v726_v43  ;;  %v1668_v46 = vpop.f32.mrb[6].mxu1  ;;  %v1775_v43 = vld [vmem:[%s2373_s3 + $0x28] sm:$0xff]   ;;  %v1776_v44 = vld [vmem:[%s2371_s1 + $0x60] sm:$0xff]  }
 0x3e4   : > { %v796_v48 = vpop.f32.mrb[7].mxu1  ;;  %v805_v62 = vadd.f32 %v1668_v46, %v741_v61  ;;  %v999_v46 = vpop.permute.xlu0 %998 }
 0x3e5   : > { %1822 = vtanh.f32 %v794_v45  ;;  %v797_v49 = vadd.f32 %v796_v48, %v731_v47 }
 0x3e7   : > { %1824 = vtanh.f32 %v797_v49 }
 0x3ef   : > { %v1823_v50 = vpop.eup %1822 }
 0x3f0   : > { %v810_v51 = vmul.f32 1.442695, %v1823_v50  ;;  %v1004_v50 = vpop.permute.xlu1 %1003 }
 0x3f1   : > { %v1825_v52 = vpop.eup %1824 }
 0x3f2   : > { %1826 = vpow2.f32 %v810_v51  ;;  %v812_v53 = vmul.f32 1.442695, %v1825_v52 }
 0x3f4   : > { %1828 = vpow2.f32 %v812_v53 }
 0x3fc   : > { %v1827_v54 = vpop.eup %1826 }
 0x3fd   : > { %v814_v57 = vmul.f32 %v1827_v54, %v2054_v9  ;;  %v1772_v9 = vld [vmem:[%s2371_s1 + $0x50] sm:$0xff]  }
 0x3fe   : > { %v1829_v58 = vpop.eup %1828 }
 0x3ff   : > { %v815_v63 = vmul.f32 %v1829_v58, %v2057_v10  ;;  %v2255_v0 = vadd.f32 %v814_v57, %v802_v56  ;;  %v1773_v10 = vld [vmem:[%s2371_s1 + $0x58] sm:$0xff]   ;;  %v1009_v58 = vpop.permute.xlu0 %1008 }
 0x401   : > { %v2257_v1 = vadd.f32 %v815_v63, %v805_v62 }
 0x403   : > { %v846_v2 = vpack.c.bf16 %v2257_v1, %v2255_v0 }
 0x405   : > { %1669 = vmatprep.subr.bf16.mxu0 %v846_v2 }
 0x406   : > { %1670 = vmatpush3.bf16.msra.mxu0 %v846_v2  ;;  %v1014_v2 = vpop.permute.xlu1 %1013 }
 0x409   : > { %1672 = vmatmul.mubr.msk.bf16.vlgmr.msra.gmra.mrb[16].mxu0 %vm359_vm0, %v1771_v3 }
 0x40a   : > { %1675 = vmatprep.mubr.msk.bf16.mxu0 %vm359_vm0, %v1772_v9 }
 0x411   : > { %1676 = vmatmul.mubr.msk.bf16.gmra.mrb[20].mxu0 %vm359_vm0, %v1773_v10 }
 0x412   : > { %1693 = vmatprep.mubr.msk.bf16.mxu0 %vm359_vm0, %v1776_v44 }
 0x4dc   : > { %v1673_v11 = vpop.f32.mrb[16].mxu0 }
 0x4dd   : > { %v962_v12 = vadd.f32 %v1673_v11, %v860_v7  ;;  %v953_v13 = vpop.f32.mrb[17].mxu0  ;;  %v1780_v7 = vld [vmem:[%s2373_s3 + $0x30] sm:$0xff]   ;;  %v1128_v11 = vpop.permute.xlu1 %1127 }
 0x4de   : > { %v954_v15 = vadd.f32 %v953_v13, %v850_v5  ;;  %v1674_v16 = vpop.f32.mrb[18].mxu0 }
 0x4df   : > { %1830 = vtanh.f32 %v962_v12  ;;  %v965_v17 = vadd.f32 %v1674_v16, %v865_v8  ;;  %v956_v18 = vpop.f32.mrb[19].mxu0  ;;  %v1123_v8 = vpop.permute.xlu0 %1122 }
 0x4e0   : > { %1832 = vtanh.f32 %v954_v15  ;;  %v957_v20 = vadd.f32 %v956_v18, %v855_v6  ;;  %v1777_v6 = vld [vmem:[%s2371_s1 + $0x68] sm:$0xff]  }
 0x4e1   : > { %1834 = vtanh.f32 %v965_v17  ;;  %v1138_v13 = vpop.permute.xlu1 %1137 }
 0x4e2   : > { %1836 = vtanh.f32 %v957_v20 }
 0x4e3   : > { %v1133_v12 = vpop.permute.xlu0 %1132 }
 0x4e4   : > { %v1677_v22 = vpop.f32.mrb[20].mxu0 }
 0x4e5   : > { %v978_v23 = vadd.f32 %v1677_v22, %v880_v21  ;;  %v969_v24 = vpop.f32.mrb[21].mxu0  ;;  %v1148_v22 = vpop.permute.xlu1 %1147 }
 0x4e6   : > { %v970_v26 = vadd.f32 %v969_v24, %v870_v14  ;;  %v1678_v27 = vpop.f32.mrb[22].mxu0 }
 0x4e7   : > { %1838 = vtanh.f32 %v978_v23  ;;  %v981_v28 = vadd.f32 %v1678_v27, %v885_v25  ;;  %v972_v29 = vpop.f32.mrb[23].mxu0  ;;  %v1143_v17 = vpop.permute.xlu0 %1142 }
 0x4e8   : > { %1840 = vtanh.f32 %v970_v26  ;;  %v973_v30 = vadd.f32 %v972_v29, %v875_v19 }
 0x4e9   : > { %v1831_v31 = vpop.eup %1830  ;;  %1842 = vtanh.f32 %v981_v28  ;;  %v1158_v28 = vpop.permute.xlu1 %1157 }
 0x4ea   : > { %v1833_v32 = vpop.eup %1832  ;;  %1844 = vtanh.f32 %v973_v30 }
 0x4eb   : > { %v1835_v33 = vpop.eup %1834  ;;  %v1153_v24 = vpop.permute.xlu0 %1152 }
 0x4ec   : > { %v1837_v34 = vpop.eup %1836  ;;  %v993_v35 = vpack.c.bf16 %v1835_v33, %v1831_v31 }
 0x4ed   : > { %v992_v36 = vpack.c.bf16 %v1837_v34, %v1833_v32 }
 0x4ef   : > { %1679 = vmatprep.subr.bf16.mxu1 %v992_v36 }
 0x4f0   : > { %1680 = vmatpush3.bf16.msra.mxu1 %v992_v36 }
 0x4f1   : > { %v1839_v37 = vpop.eup %1838  ;;  %1681 = vmatprep.subr.bf16.mxu1 %v993_v35 }
 0x4f2   : > { %v1841_v38 = vpop.eup %1840 }
 0x4f3   : > { %v1843_v39 = vpop.eup %1842 }
 0x4f4   : > { %v1845_v40 = vpop.eup %1844  ;;  %1682 = vmatpush3.bf16.msra.mxu1 %v993_v35  ;;  %v995_v41 = vpack.c.bf16 %v1843_v39, %v1839_v37 }
 0x4f5   : > { %v994_v42 = vpack.c.bf16 %v1845_v40, %v1841_v38 }
 0x4f7   : > { %1683 = vmatprep.subr.bf16.mxu1 %v994_v42 }
 0x4f8   : > { %1684 = vmatpush3.bf16.msra.mxu1 %v994_v42 }
 0x4f9   : > { %1685 = vmatprep.subr.bf16.mxu1 %v995_v41 }
 0x4fc   : > { %1686 = vmatpush3.bf16.msra.mxu1 %v995_v41 }
 0x4ff   : > { %1688 = vmatmul.mubr.msk.bf16.vlgmr.msra.gmra.mrb[8].mxu1 %vm479_vm1, %v1775_v43 }
 0x500   : > { %1709 = vmatprep.mubr.msk.bf16.mxu1 %vm479_vm1, %v1780_v7 }
 0x5d2   : > { %v1689_v45 = vpop.f32.mrb[8].mxu1 }
 0x5d3   : > { %v1066_v47 = vpop.f32.mrb[9].mxu1  ;;  %v1075_v61 = vadd.f32 %v1689_v45, %v1009_v58 }
 0x5d4   : > { %v1067_v48 = vadd.f32 %v1066_v47, %v999_v46  ;;  %v1690_v49 = vpop.f32.mrb[10].mxu1  ;;  %v1781_v46 = vld [vmem:[%s2373_s3 + $0x38] sm:$0xff]  }
 0x5d5   : > { %v1069_v51 = vpop.f32.mrb[11].mxu1  ;;  %v1078_v3 = vadd.f32 %v1690_v49, %v1014_v2 }
 0x5d6   : > { %1846 = vtanh.f32 %v1067_v48  ;;  %v1070_v52 = vadd.f32 %v1069_v51, %v1004_v50  ;;  %v1272_v48 = vpop.permute.xlu0 %1271 }
 0x5d8   : > { %1848 = vtanh.f32 %v1070_v52  ;;  %v1277_v52 = vpop.permute.xlu1 %1276 }
 0x5e0   : > { %v1847_v53 = vpop.eup %1846 }
 0x5e1   : > { %v1083_v54 = vmul.f32 1.442695, %v1847_v53 }
 0x5e2   : > { %v1849_v55 = vpop.eup %1848 }
 0x5e3   : > { %1850 = vpow2.f32 %v1083_v54  ;;  %v1085_v56 = vmul.f32 1.442695, %v1849_v55 }
 0x5e5   : > { %1852 = vpow2.f32 %v1085_v56 }
 0x5ed   : > { %v1851_v57 = vpop.eup %1850 }
 0x5ee   : > { %v1087_v62 = vmul.f32 %v1851_v57, %v2223_v59  ;;  %v1778_v59 = vld [vmem:[%s2371_s1 + $0x70] sm:$0xff]  }
 0x5ef   : > { %v1853_v63 = vpop.eup %1852 }
 0x5f0   : > { %v1088_v9 = vmul.f32 %v1853_v63, %v2225_v60  ;;  %v1089_v10 = vadd.f32 %v1087_v62, %v1075_v61  ;;  %v1779_v60 = vld [vmem:[%s2371_s1 + $0x78] sm:$0xff]   ;;  %v1282_v62 = vpop.permute.xlu0 %1281 }
 0x5f2   : > { %v1090_v4 = vadd.f32 %v1088_v9, %v1078_v3  ;;  %1366 = vst [vmem:[%s2288_s14 + $0x10] sm:$0xff] %v1089_v10  ;;  %v1287_v9 = vpop.permute.xlu1 %1286 }
 0x5f4   : > { %v1119_v5 = vpack.c.bf16 %v1090_v4, %v1089_v10  ;;  %1367 = vst [vmem:[%s2288_s14 + $0x18] sm:$0xff] %v1090_v4 }
 0x5f6   : > { %1691 = vmatprep.subr.bf16.mxu0 %v1119_v5 }
 0x5f7   : > { %1692 = vmatpush3.bf16.msra.mxu0 %v1119_v5 }
 0x5fa   : > { %1694 = vmatmul.mubr.msk.bf16.vlgmr.msra.gmra.mrb[24].mxu0 %vm359_vm0, %v1777_v6 }
 0x5fb   : > { %1697 = vmatprep.mubr.msk.bf16.mxu0 %vm359_vm0, %v1778_v59 }
 0x602   : > { %1698 = vmatmul.mubr.msk.bf16.gmra.mrb[28].mxu0 %vm359_vm0, %v1779_v60 }
 0x6cd   : > { %v1695_v14 = vpop.f32.mrb[24].mxu0 }
 0x6ce   : > { %v1235_v15 = vadd.f32 %v1695_v14, %v1133_v12  ;;  %v1226_v16 = vpop.f32.mrb[25].mxu0 }
 0x6cf   : > { %v1227_v18 = vadd.f32 %v1226_v16, %v1123_v8  ;;  %v1696_v19 = vpop.f32.mrb[26].mxu0 }
 0x6d0   : > { %1854 = vtanh.f32 %v1235_v15  ;;  %v1238_v20 = vadd.f32 %v1696_v19, %v1138_v13  ;;  %v1229_v21 = vpop.f32.mrb[27].mxu0 }
 0x6d1   : > { %1856 = vtanh.f32 %v1227_v18  ;;  %v1230_v23 = vadd.f32 %v1229_v21, %v1128_v11 }
 0x6d2   : > { %1858 = vtanh.f32 %v1238_v20 }
 0x6d3   : > { %1860 = vtanh.f32 %v1230_v23 }
 0x6d5   : > { %v1699_v25 = vpop.f32.mrb[28].mxu0 }
 0x6d6   : > { %v1251_v26 = vadd.f32 %v1699_v25, %v1153_v24  ;;  %v1242_v27 = vpop.f32.mrb[29].mxu0 }
 0x6d7   : > { %v1243_v29 = vadd.f32 %v1242_v27, %v1143_v17  ;;  %v1700_v30 = vpop.f32.mrb[30].mxu0 }
 0x6d8   : > { %1862 = vtanh.f32 %v1251_v26  ;;  %v1254_v31 = vadd.f32 %v1700_v30, %v1158_v28  ;;  %v1245_v32 = vpop.f32.mrb[31].mxu0 }
 0x6d9   : > { %1864 = vtanh.f32 %v1243_v29  ;;  %v1246_v33 = vadd.f32 %v1245_v32, %v1148_v22 }
 0x6da   : > { %v1855_v34 = vpop.eup %1854  ;;  %1866 = vtanh.f32 %v1254_v31 }
 0x6db   : > { %v1857_v35 = vpop.eup %1856  ;;  %1868 = vtanh.f32 %v1246_v33 }
 0x6dc   : > { %v1859_v36 = vpop.eup %1858 }
 0x6dd   : > { %v1861_v37 = vpop.eup %1860  ;;  %v1266_v38 = vpack.c.bf16 %v1859_v36, %v1855_v34 }
 0x6de   : > { %v1265_v39 = vpack.c.bf16 %v1861_v37, %v1857_v35 }
 0x6e0   : > { %1701 = vmatprep.subr.bf16.mxu1 %v1265_v39 }
 0x6e1   : > { %1702 = vmatpush3.bf16.msra.mxu1 %v1265_v39 }
 0x6e2   : > { %v1863_v40 = vpop.eup %1862  ;;  %1703 = vmatprep.subr.bf16.mxu1 %v1266_v38 }
 0x6e3   : > { %v1865_v41 = vpop.eup %1864 }
 0x6e4   : > { %v1867_v42 = vpop.eup %1866 }
 0x6e5   : > { %v1869_v43 = vpop.eup %1868  ;;  %1704 = vmatpush3.bf16.msra.mxu1 %v1266_v38  ;;  %v1268_v44 = vpack.c.bf16 %v1867_v42, %v1863_v40 }
 0x6e6   : > { %v1267_v45 = vpack.c.bf16 %v1869_v43, %v1865_v41 }
 0x6e8   : > { %1705 = vmatprep.subr.bf16.mxu1 %v1267_v45 }
 0x6e9   : > { %1706 = vmatpush3.bf16.msra.mxu1 %v1267_v45 }
 0x6ea   : > { %1707 = vmatprep.subr.bf16.mxu1 %v1268_v44 }
 0x6ed   : > { %1708 = vmatpush3.bf16.msra.mxu1 %v1268_v44 }
 0x6f0   : > { %1710 = vmatmul.mubr.msk.bf16.vlgmr.msra.gmra.mrb[12].mxu1 %vm479_vm1, %v1781_v46 }
 0x7c3   : > { %v1711_v47 = vpop.f32.mrb[12].mxu1 }
 0x7c4   : > { %v1339_v49 = vpop.f32.mrb[13].mxu1  ;;  %v1348_v63 = vadd.f32 %v1711_v47, %v1282_v62 }
 0x7c5   : > { %v1340_v50 = vadd.f32 %v1339_v49, %v1272_v48  ;;  %v1712_v51 = vpop.f32.mrb[14].mxu1 }
 0x7c6   : > { %v1342_v53 = vpop.f32.mrb[15].mxu1  ;;  %v1351_v4 = vadd.f32 %v1712_v51, %v1287_v9 }
 0x7c7   : > { %1870 = vtanh.f32 %v1340_v50  ;;  %v1343_v54 = vadd.f32 %v1342_v53, %v1277_v52 }
 0x7c9   : > { %1872 = vtanh.f32 %v1343_v54 }
 0x7d1   : > { %v1871_v55 = vpop.eup %1870 }
 0x7d2   : > { %v1356_v56 = vmul.f32 1.442695, %v1871_v55 }
 0x7d3   : > { %v1873_v57 = vpop.eup %1872 }
 0x7d4   : > { %1874 = vpow2.f32 %v1356_v56  ;;  %v1358_v58 = vmul.f32 1.442695, %v1873_v57 }
 0x7d6   : > { %1876 = vpow2.f32 %v1358_v58 }
 0x7de   : > { %v1875_v61 = vpop.eup %1874 }
 0x7df   : > { %v1360_v2 = vmul.f32 %v1875_v61, %v2255_v0 }
 0x7e0   : > { %v1877_v3 = vpop.eup %1876 }
 0x7e1   : > { %v1362_v10 = vadd.f32 %v1360_v2, %v1348_v63  ;;  %v1361_v5 = vmul.f32 %v1877_v3, %v2257_v1 }
 0x7e3   : > { %1364 = vst [vmem:[%s2288_s14] sm:$0xff] %v1362_v10  ;;  %v1363_v0 = vadd.f32 %v1361_v5, %v1351_v4 }
 0x7e5   : > { %1365 = vst [vmem:[%s2288_s14 + $0x8] sm:$0xff] %v1363_v0 }
 0x7e6   : > { %1891 = shalt.err (!%p1888_p5)
}
 0x7e7   : > { %s1892_s16 = scalar_lea.hbm %s2322_s15, 512  ;;  %s1896_s6 = scalar_lea.hbm %s2375_s5, 1024 }
 0x7e8   : > { %p1893_p7 = scmp.ne.s32.totalorder %s2322_s15, %s1892_s16  ;;  %p1897_p12 = scmp.lt.u32.totalorder %s2322_s15, %s2375_s5 }
 0x7e9   : > { %p1898_p13 = scmp.lt.u32.totalorder %s1896_s6, %s1892_s16  ;;  %p1900_p1 = scmp.lt.u32.totalorder %s1892_s16, %s2322_s15 }
 0x7ea   : > { %p1894_p10 = pnand %p1893_p7, %p2015_p6 }
 0x7eb   : > { %p1899_p0 = por %p1898_p13, %p1897_p12 }
 0x7ec   : > { %p1895_p11 = pneg %p1894_p10 }
 0x7ed   : > { %p1901_p2 = por %p1900_p1, %p1899_p0 }
 0x7ef   : > { %p1902_p3 = pnand %p1901_p2, %p1895_p11 }
 0x7f1   : > { %1905 = shalt.err (!%p1902_p3)
}
 0x7f2   : > { %s1944_s9 = smov 128   ;;  %s1945_s11 = smov 256  }
 0x7f3   : > { %s1946_s12 = smov 8  }
 0x7f4   : > { %1713 = dma.vmem_to_hbm [thread:$0]  (%p2015_p6), %s2316_s10, 512, %s2322_s15, %s2328_s22, %s1944_s9, %s1945_s11, %s1946_s12  }
 0x7f5 PF: > { %s1396_s13 = sand.u32 1, %s1928_s18   ;;  %p1716_p4 = pnand %p1451_p9, %p2019_p8 }
 0x7f6   : > { %s1397_s23 = scalar_lea.sflag [#allocation4], %s1396_s13 }
 0x7f7   : > { %1923 = dma.done.wait (!%p1716_p4), %s1397_s23, 512  }
 0x7f8   : > { %1925 = vsyncadd (!%p1716_p4), %s1397_s23, 4294966784  ;;  %p15_p5 = scmp.ge.s32.totalorder %s2000_s24, 4   ;;  %s2378_s18 = smov %s1932_s19 }
 0x7f9   : > { %s2379_s19 = smov %s1936_s20  ;;  %s2380_s20 = smov %s2013_s27 }
 0x7fa   : > { %s2381_s21 = smov %s2000_s24  ;;  %17 = sbr.rel (!%p15_p5) target bundleno = 3 (0x3), region = 130 }
 0x801   :  { %1402 = vsyncpa [#allocation4], 1 }
 0x802   :  { %1404 = vsyncpa [#allocation4 + $0x1], 1 }

</bundles_post_ra>
